<compile_context>
chip_gen: v7x
topology: tpu7x:2x2x1
jax: 0.10.0
libtpu: 0.0.40
codegen_flags: <defaults>
</compile_context>

<pallas_src>
import jax
import jax.numpy as jnp
from jax.experimental import pallas as pl
from jax.experimental.pallas import tpu as pltpu

# ---------------------------------------------------------------- dimensions
D_IN = 8          # stand-in for len(data.columns)
H = 100           # logical hidden width of the module
D_OUT = 3

LANES = 128       # vreg lane width
SUB = 8           # sublane granularity


def _round_up(n, m):
    return (n + m - 1) // m * m


D_IN_PAD = _round_up(D_IN, SUB)     # 8
H_PAD = _round_up(H, LANES)         # 128 (zero-padded hidden width)

# Packed parameter slab layout: one (K_TOTAL, 128) f32 buffer, all offsets
# sublane (8-row) aligned so in-kernel static slices stay tile-aligned.
W1_OFF = 0                          # (D_IN_PAD, 128)   w1 zero-padded
B1_OFF = W1_OFF + D_IN_PAD          # row: b1 zero-padded to 128 lanes
W2_OFF = B1_OFF + SUB               # (128, 128)        w2 zero-padded
B2_OFF = W2_OFF + H_PAD             # row: b2
W3_OFF = B2_OFF + SUB               # (128, 128)        w3 zero-padded (3 live cols)
B3_OFF = W3_OFF + H_PAD             # row: b3
K_TOTAL = B3_OFF + SUB              # 288 rows -> ~144 KiB f32


# ------------------------------------------------------------------- kernel
def _mlp_kernel(x_ref, p_ref, o_ref):
    # x_ref: (BM, D_IN_PAD) f32 batch tile
    # p_ref: (K_TOTAL, 128) f32 packed weights/biases (VMEM-resident across grid)
    # o_ref: (BM, D_OUT) f32 output tile
    x = x_ref[...]

    w1 = p_ref[W1_OFF:W1_OFF + D_IN_PAD, :]          # (D_IN_PAD, 128)
    b1 = p_ref[B1_OFF:B1_OFF + 1, :]                 # (1, 128)
    w2 = p_ref[W2_OFF:W2_OFF + H_PAD, :]             # (128, 128)
    b2 = p_ref[B2_OFF:B2_OFF + 1, :]                 # (1, 128)
    w3 = p_ref[W3_OFF:W3_OFF + H_PAD, :]             # (128, 128), cols >= 3 are zero
    b3 = p_ref[B3_OFF:B3_OFF + 1, :]                 # (1, 128), lanes >= 3 are zero

    h1 = jnp.dot(x, w1, preferred_element_type=jnp.float32) + b1
    h1 = jnp.maximum(h1, 0.0)

    h2 = jnp.dot(h1, w2, preferred_element_type=jnp.float32) + b2
    h2 = jnp.maximum(h2, 0.0)

    out = jnp.dot(h2, w3, preferred_element_type=jnp.float32) + b3   # (BM, 128)
    o_ref[...] = out[:, :D_OUT].astype(o_ref.dtype)


# ------------------------------------------------------------------ wrapper
def mlp_forward(x, packed_params, *, block_m=256):
    """x: (B, D_IN) f32; packed_params: (K_TOTAL, 128) f32 slab."""
    B, d = x.shape
    assert d == D_IN, f"expected {D_IN} input features, got {d}"

    # Pad feature dim (no-op when D_IN is already a multiple of 8).
    if d < D_IN_PAD:
        x = jnp.pad(x, ((0, 0), (0, D_IN_PAD - d)))

    # Batch tiling: BM multiple of 8. block_m=256 amortizes the ~0.35us
    # per-step overhead and keeps the per-step working set tiny
    # (256*128*4B activations + 144 KiB weights) -- well under the 32 MiB
    # scoped-VMEM default on v7x.
    BM = min(block_m, _round_up(B, SUB))
    B_pad = _round_up(B, BM)
    if B_pad != B:
        x = jnp.pad(x, ((0, B_pad - B), (0, 0)))

    out = pl.pallas_call(
        _mlp_kernel,
        out_shape=jax.ShapeDtypeStruct((B_pad, D_OUT), jnp.float32),
        grid=(B_pad // BM,),
        in_specs=[
            pl.BlockSpec((BM, D_IN_PAD), lambda i: (i, 0)),
            # Same block index every step -> weight slab stays VMEM-resident.
            pl.BlockSpec((K_TOTAL, LANES), lambda i: (0, 0)),
        ],
        out_specs=pl.BlockSpec((BM, D_OUT), lambda i: (i, 0)),
        compiler_params=pltpu.CompilerParams(
            dimension_semantics=("parallel",)),
    )(x, packed_params)

    return out[:B]


# ------------------------------------------------------------------- params
def init_params(key):
    """PyTorch-default-like init: U(-1/sqrt(fan_in), 1/sqrt(fan_in))."""
    ks = jax.random.split(key, 6)

    def lin(kw, kb, fan_in, fan_out):
        bound = 1.0 / jnp.sqrt(float(fan_in))
        w = jax.random.uniform(kw, (fan_in, fan_out), jnp.float32, -bound, bound)
        b = jax.random.uniform(kb, (fan_out,), jnp.float32, -bound, bound)
        return w, b

    w1, b1 = lin(ks[0], ks[1], D_IN, H)
    w2, b2 = lin(ks[2], ks[3], H, H)
    w3, b3 = lin(ks[4], ks[5], H, D_OUT)
    return (w1, b1, w2, b2, w3, b3)


def pack_params(params):
    """Zero-pad hidden width to 128 and pack everything into one f32 slab."""
    w1, b1, w2, b2, w3, b3 = params
    slab = jnp.zeros((K_TOTAL, LANES), jnp.float32)
    slab = slab.at[W1_OFF:W1_OFF + D_IN, :H].set(w1)
    slab = slab.at[B1_OFF, :H].set(b1)
    slab = slab.at[W2_OFF:W2_OFF + H, :H].set(w2)
    slab = slab.at[B2_OFF, :H].set(b2)
    slab = slab.at[W3_OFF:W3_OFF + H, :D_OUT].set(w3)
    slab = slab.at[B3_OFF, :D_OUT].set(b3)
    return slab


# --------------------------------------------------------------------- main
if __name__ == "__main__":
    key = jax.random.PRNGKey(0)
    k_x, k_p = jax.random.split(key)

    BATCH = 8
    x = jax.random.normal(k_x, (BATCH, D_IN), dtype=jnp.float32)
    params = init_params(k_p)
    packed = pack_params(params)

    out = mlp_forward(x, packed)
    out = jax.block_until_ready(out)

    # Plain-JAX reference on the UNPADDED parameters (zero padding must be
    # numerically invisible).
    w1, b1, w2, b2, w3, b3 = params
    ref = jnp.maximum(x @ w1 + b1, 0.0)
    ref = jnp.maximum(ref @ w2 + b2, 0.0)
    ref = ref @ w3 + b3

    assert out.shape == (BATCH, D_OUT)
    assert jnp.allclose(out, ref, atol=1e-5, rtol=1e-5)

    print("KERNEL_OK")
</pallas_src>

<mosaic_0001>
module attributes {stable_mosaic.version = 11 : i64} {
  func.func @_mlp_kernel(%arg0: i32, %arg1: memref<8x8xf32, #tpu.memory_space<vmem>>, %arg2: memref<288x128xf32, #tpu.memory_space<vmem>>, %arg3: memref<8x3xf32, #tpu.memory_space<vmem>>) attributes {dimension_semantics = [#tpu.dimension_semantics<parallel>], iteration_bounds = array<i64: 1>, scalar_prefetch = 0 : i64, scratch_operands = 0 : i64, tpu.core_type = #tpu.core_type<tc>, window_params = [{transform_indices = @transform_0, window_bounds = array<i64: 8, 8>}, {pipeline_mode = #tpu.pipeline_mode<synchronous>, transform_indices = @transform_1, window_bounds = array<i64: 288, 128>}, {transform_indices = @transform_2, window_bounds = array<i64: 8, 3>}]} {
    %c0 = arith.constant 0 : index
    %c0_0 = arith.constant 0 : index
    %0 = vector.load %arg1[%c0, %c0_0] : memref<8x8xf32, #tpu.memory_space<vmem>>, vector<8x8xf32>
    %c0_1 = arith.constant 0 : index
    %c0_2 = arith.constant 0 : index
    %1 = vector.load %arg2[%c0_1, %c0_2] : memref<288x128xf32, #tpu.memory_space<vmem>>, vector<8x128xf32>
    %c8 = arith.constant 8 : index
    %c0_3 = arith.constant 0 : index
    %2 = vector.load %arg2[%c8, %c0_3] : memref<288x128xf32, #tpu.memory_space<vmem>>, vector<1x128xf32>
    %c16 = arith.constant 16 : index
    %c0_4 = arith.constant 0 : index
    %3 = vector.load %arg2[%c16, %c0_4] : memref<288x128xf32, #tpu.memory_space<vmem>>, vector<128x128xf32>
    %c144 = arith.constant 144 : index
    %c0_5 = arith.constant 0 : index
    %4 = vector.load %arg2[%c144, %c0_5] : memref<288x128xf32, #tpu.memory_space<vmem>>, vector<1x128xf32>
    %c152 = arith.constant 152 : index
    %c0_6 = arith.constant 0 : index
    %5 = vector.load %arg2[%c152, %c0_6] : memref<288x128xf32, #tpu.memory_space<vmem>>, vector<128x128xf32>
    %c280 = arith.constant 280 : index
    %c0_7 = arith.constant 0 : index
    %6 = vector.load %arg2[%c280, %c0_7] : memref<288x128xf32, #tpu.memory_space<vmem>>, vector<1x128xf32>
    %cst = arith.constant dense<0.000000e+00> : vector<8x128xf32>
    %7 = tpu.matmul %0, %1, %cst {dimension_numbers = #tpu.dot_dimension_numbers<[1], [0], [0], [1], [0, 0, 1, 1], [], []>} : vector<8x8xf32>, vector<8x128xf32>, vector<8x128xf32> -> vector<8x128xf32>
    %8 = vector.broadcast %2 : vector<1x128xf32> to vector<8x128xf32>
    %9 = arith.addf %7, %8 : vector<8x128xf32>
    %cst_8 = arith.constant 0.000000e+00 : f32
    %10 = vector.broadcast %cst_8 : f32 to vector<8x128xf32>
    %11 = arith.maximumf %9, %10 : vector<8x128xf32>
    %cst_9 = arith.constant dense<0.000000e+00> : vector<8x128xf32>
    %12 = tpu.matmul %11, %3, %cst_9 {dimension_numbers = #tpu.dot_dimension_numbers<[1], [0], [0], [1], [0, 0, 1, 1], [], []>} : vector<8x128xf32>, vector<128x128xf32>, vector<8x128xf32> -> vector<8x128xf32>
    %13 = vector.broadcast %4 : vector<1x128xf32> to vector<8x128xf32>
    %14 = arith.addf %12, %13 : vector<8x128xf32>
    %cst_10 = arith.constant 0.000000e+00 : f32
    %15 = vector.broadcast %cst_10 : f32 to vector<8x128xf32>
    %16 = arith.maximumf %14, %15 : vector<8x128xf32>
    %cst_11 = arith.constant dense<0.000000e+00> : vector<8x128xf32>
    %17 = tpu.matmul %16, %5, %cst_11 {dimension_numbers = #tpu.dot_dimension_numbers<[1], [0], [0], [1], [0, 0, 1, 1], [], []>} : vector<8x128xf32>, vector<128x128xf32>, vector<8x128xf32> -> vector<8x128xf32>
    %18 = vector.broadcast %6 : vector<1x128xf32> to vector<8x128xf32>
    %19 = arith.addf %17, %18 : vector<8x128xf32>
    %20 = vector.extract_strided_slice %19 {offsets = [0, 0], sizes = [8, 3], strides = [1, 1]} : vector<8x128xf32> to vector<8x3xf32>
    %c0_12 = arith.constant 0 : index
    %c0_13 = arith.constant 0 : index
    %21 = vector.load %arg3[%c0_12, %c0_13] : memref<8x3xf32, #tpu.memory_space<vmem>>, vector<8x3xf32>
    tpu.vector_store %arg3[%c0_12, %c0_13], %20 {strides = array<i32>} : memref<8x3xf32, #tpu.memory_space<vmem>>, vector<8x3xf32>,
    return
  }
  func.func @transform_0(%arg0: i32) -> (i32, i32) {
    %c0_i32 = arith.constant 0 : i32
    %c0_i32_0 = arith.constant 0 : i32
    return %arg0, %c0_i32 : i32, i32
  }
  func.func @transform_1(%arg0: i32) -> (i32, i32) {
    %c0_i32 = arith.constant 0 : i32
    %c0_i32_0 = arith.constant 0 : i32
    %c0_i32_1 = arith.constant 0 : i32
    return %c0_i32, %c0_i32_0 : i32, i32
  }
  func.func @transform_2(%arg0: i32) -> (i32, i32) {
    %c0_i32 = arith.constant 0 : i32
    %c0_i32_0 = arith.constant 0 : i32
    return %arg0, %c0_i32 : i32, i32
  }
}

</mosaic_0001>

<bundles_post_ra>
// kernel: tpu_custom_call.1
= control target key start
LH: loop header
LB: loop body
LE: loop exit
PB: predicated region body
PF: predicated region fallthrough
CT: control target
= control target key end

     0   :  { %7 = vsyncpa [#allocation3], 0  ;;  %s603_s0 = inlined_call_operand.hbm [shape: f32[8,8], index: 0, kind: input, shape index: {}]   ;;  %s604_s1 = inlined_call_operand.hbm [shape: f32[288,128], index: 1, kind: input, shape index: {}]   ;;  %s605_s2 = inlined_call_operand.vmem [shape: f32[8,3], index: 2, kind: output, shape index: {}]  }
   0x1   :  { %8 = vsyncpa [#allocation5], 0  ;;  %s528_s9 = smov [#allocation2]   ;;  %s529_s11 = smov [#allocation4]  }
   0x2   :  { %s15_s10 = sshll.u32 %s528_s9, 4  ;;  %s24_s12 = sshll.u32 %s529_s11, 4  ;;  %s16_s10 = int_to_ptr.vmem [resolvable:$true] %s15_s10  ;;  %s550_s12 = int_to_ptr.vmem [resolvable:$true] %s24_s12 }
   0x3   :  { %s480_s15 = scalar_lea.hbm %s603_s0, 128 }
   0x4   :  { %p481_p0 = scmp.ne.s32.totalorder %s603_s0, %s480_s15  ;;  %p484_p1 = scmp.lt.u32.totalorder %s480_s15, %s603_s0 }
   0x6   :  { %p486_p2 = pnand %p484_p1, %p481_p0 }
   0x8   :  { %489 = shalt.err (!%p486_p2)
}
   0x9   :  { %s490_s20 = scalar_lea.vmem %s16_s10, 128  ;;  %p495_p4 = scmp.lt.s32.totalorder %s16_s10, %s16_s10 }
   0xa   :  { %p491_p3 = scmp.ne.s32.totalorder %s16_s10, %s490_s20  ;;  %p496_p5 = scmp.lt.s32.totalorder %s490_s20, %s490_s20 }
   0xc   :  { %p497_p6 = por %p496_p5, %p495_p4 }
   0xe   :  { %p498_p7 = pnand %p497_p6, %p491_p3 }
  0x10   :  { %501 = shalt.err (!%p498_p7)
}
  0x11   :  { %18 = dma.hbm_to_vmem [thread:$0]  %s603_s0, 128, %s16_s10, [#allocation3]  }
  0x12   :  { %s502_s25 = scalar_lea.hbm %s604_s1, 4608 }
  0x13   :  { %p503_p8 = scmp.ne.s32.totalorder %s604_s1, %s502_s25  ;;  %p506_p9 = scmp.lt.u32.totalorder %s502_s25, %s604_s1 }
  0x15   :  { %p508_p10 = pnand %p506_p9, %p503_p8 }
  0x17   :  { %511 = shalt.err (!%p508_p10)
}
  0x18   :  { %s512_s30 = scalar_lea.vmem %s550_s12, 4608  ;;  %p517_p12 = scmp.lt.s32.totalorder %s550_s12, %s550_s12 }
  0x19   :  { %p513_p11 = scmp.ne.s32.totalorder %s550_s12, %s512_s30  ;;  %p518_p13 = scmp.lt.s32.totalorder %s512_s30, %s512_s30 }
  0x1b   :  { %p519_p0 = por %p518_p13, %p517_p12 }
  0x1d   :  { %p520_p1 = pnand %p519_p0, %p513_p11 }
  0x1f   :  { %523 = shalt.err (!%p520_p1)
}
  0x20   :  { %s530_s0 = smov 128   ;;  %s531_s3 = smov 8  }
  0x21   :  { %30 = dma.hbm_to_vmem [thread:$0]  %s604_s1, 4608, %s550_s12, [#allocation5], %s530_s0, %s530_s0, %s531_s3  }
  0x22   :  { %524 = dma.done.wait [#allocation3], 128  }
  0x23   :  { %525 = vsyncadd [#allocation3], 4294967168 }
  0x24   :  { %526 = dma.done.wait [#allocation5], 4608  }
  0x25   :  { %527 = vsyncadd [#allocation5], 4294962688  ;;  %v532_v0 = vmov 0.0   ;;  %vm533_vm0 = vmmov 0   ;;  %v534_v1 = vmov 0.0|0.0   ;;  %vm78_vm1 = vcmask 64512  }
  0x26   :  { %350 = vmatprep.subr.mxu0 %v532_v0  ;;  %352 = vmatprep.mubr.msk.f32.mxu0 %vm533_vm0, %v532_v0  ;;  %v38_v2 = vld [vmem:[#allocation4] sm:$0xff]  ;;  %v37_v3 = vld [vmem:[#allocation2] sm:$0xff]  ;;  %v40_v4 = vld [vmem:[#allocation4 + $0x10] sm:$0xff]  ;;  %vm302_vm2 = vcmask 23552  }
  0x27   :  { %425 = vmatprep.subr.bf16.mxu1 %v534_v1  ;;  %387 = vmatprep.mubr.msk.f32.mxu1 %vm533_vm0, %v532_v0  ;;  %v41_v5 = vld [vmem:[#allocation4 + $0x18] sm:$0xff]  ;;  %v42_v6 = vld [vmem:[#allocation4 + $0x20] sm:$0xff]  ;;  %v43_v7 = vld [vmem:[#allocation4 + $0x28] sm:$0xff] }
  0x28   :  { %351 = vmatpush3.msra.mxu0 %v38_v2  ;;  %v426_v8 = vpack.c.bf16 %v41_v5, %v40_v4  ;;  %v429_v9 = vpack.c.bf16 %v43_v7, %v42_v6  ;;  %v44_v10 = vld [vmem:[#allocation4 + $0x30] sm:$0xff]  ;;  %v45_v11 = vld [vmem:[#allocation4 + $0x38] sm:$0xff]  ;;  %v46_v13 = vld [vmem:[#allocation4 + $0x40] sm:$0xff] }
  0x29   :  { %353 = vmatmul.mubr.msk.f32.vlgmr.msra.gmra.mrb[0].mxu0 %vm78_vm1, %v37_v3  ;;  %449 = vmatprep.subr.bf16.mxu0 %v534_v1  ;;  %v432_v12 = vpack.c.bf16 %v45_v11, %v44_v10  ;;  %v47_v14 = vld [vmem:[#allocation4 + $0x48] sm:$0xff]  ;;  %v48_v16 = vld [vmem:[#allocation4 + $0x50] sm:$0xff]  ;;  %v49_v17 = vld [vmem:[#allocation4 + $0x58] sm:$0xff] }
  0x2a   :  { %422 = vmatprep.mubr.msk.f32.mxu0 %vm533_vm0, %v532_v0  ;;  %427 = vmatpush3.bf16.msra.mxu1 %v426_v8  ;;  %v435_v15 = vpack.c.bf16 %v47_v14, %v46_v13  ;;  %v438_v18 = vpack.c.bf16 %v49_v17, %v48_v16  ;;  %v50_v19 = vld [vmem:[#allocation4 + $0x60] sm:$0xff]  ;;  %v51_v20 = vld [vmem:[#allocation4 + $0x68] sm:$0xff]  ;;  %v52_v22 = vld [vmem:[#allocation4 + $0x70] sm:$0xff] }
  0x2b   :  { %428 = vmatprep.subr.bf16.mxu1 %v534_v1  ;;  %v441_v21 = vpack.c.bf16 %v51_v20, %v50_v19  ;;  %v53_v23 = vld [vmem:[#allocation4 + $0x78] sm:$0xff]  ;;  %v54_v25 = vld [vmem:[#allocation4 + $0x80] sm:$0xff]  ;;  %v55_v26 = vld [vmem:[#allocation4 + $0x88] sm:$0xff] }
  0x2c   :  { %v444_v24 = vpack.c.bf16 %v53_v23, %v52_v22  ;;  %v447_v27 = vpack.c.bf16 %v55_v26, %v54_v25  ;;  %v57_v28 = vld [vmem:[#allocation4 + $0x98] sm:$0xff]  ;;  %v58_v29 = vld [vmem:[#allocation4 + $0xa0] sm:$0xff]  ;;  %v59_v30 = vld [vmem:[#allocation4 + $0xa8] sm:$0xff] }
  0x2d   :  { %v450_v31 = vpack.c.bf16 %v58_v29, %v57_v28  ;;  %v60_v32 = vld [vmem:[#allocation4 + $0xb0] sm:$0xff]  ;;  %v61_v34 = vld [vmem:[#allocation4 + $0xb8] sm:$0xff]  ;;  %v62_v35 = vld [vmem:[#allocation4 + $0xc0] sm:$0xff] }
  0x2e   :  { %430 = vmatpush3.bf16.msra.mxu1 %v429_v9  ;;  %v453_v33 = vpack.c.bf16 %v60_v32, %v59_v30  ;;  %v456_v36 = vpack.c.bf16 %v62_v35, %v61_v34  ;;  %v63_v37 = vld [vmem:[#allocation4 + $0xc8] sm:$0xff]  ;;  %v64_v38 = vld [vmem:[#allocation4 + $0xd0] sm:$0xff]  ;;  %v65_v40 = vld [vmem:[#allocation4 + $0xd8] sm:$0xff] }
  0x2f   :  { %431 = vmatprep.subr.bf16.mxu1 %v534_v1  ;;  %451 = vmatpush3.bf16.msra.mxu0 %v450_v31  ;;  %v459_v39 = vpack.c.bf16 %v64_v38, %v63_v37  ;;  %v66_v41 = vld [vmem:[#allocation4 + $0xe0] sm:$0xff]  ;;  %v67_v43 = vld [vmem:[#allocation4 + $0xe8] sm:$0xff]  ;;  %v68_v44 = vld [vmem:[#allocation4 + $0xf0] sm:$0xff] }
  0x30   :  { %452 = vmatprep.subr.bf16.mxu0 %v534_v1  ;;  %v462_v42 = vpack.c.bf16 %v66_v41, %v65_v40  ;;  %v465_v45 = vpack.c.bf16 %v68_v44, %v67_v43  ;;  %v69_v46 = vld [vmem:[#allocation4 + $0xf8] sm:$0xff]  ;;  %v70_v47 = vld [vmem:[#allocation4 + $0x100] sm:$0xff]  ;;  %v310_v49 = vld [vmem:[#allocation4 + $0x8] ss:$0 sm:$0xff] }
  0x31   :  { %v468_v48 = vpack.c.bf16 %v70_v47, %v69_v46  ;;  %v71_v54 = vld [vmem:[#allocation4 + $0x108] sm:$0xff]  ;;  %v72_v55 = vld [vmem:[#allocation4 + $0x110] sm:$0xff]  ;;  %v313_v62 = vld [vmem:[#allocation4 + $0x118] ss:$0 sm:$0xff] }
  0x32   :  { %433 = vmatpush3.bf16.msra.mxu1 %v432_v12  ;;  %v471_v56 = vpack.c.bf16 %v72_v55, %v71_v54  ;;  %v312_v57 = vld [vmem:[#allocation4 + $0x90] ss:$0 sm:$0xff] }
  0x33   :  { %434 = vmatprep.subr.bf16.mxu1 %v534_v1  ;;  %454 = vmatpush3.bf16.msra.mxu0 %v453_v33 }
  0x34   :  { %455 = vmatprep.subr.bf16.mxu0 %v534_v1 }
  0x36   :  { %436 = vmatpush3.bf16.msra.mxu1 %v435_v15 }
  0x37   :  { %437 = vmatprep.subr.bf16.mxu1 %v534_v1  ;;  %457 = vmatpush3.bf16.msra.mxu0 %v456_v36 }
  0x38   :  { %458 = vmatprep.subr.bf16.mxu0 %v534_v1 }
  0x3a   :  { %439 = vmatpush3.bf16.msra.mxu1 %v438_v18 }
  0x3b   :  { %440 = vmatprep.subr.bf16.mxu1 %v534_v1  ;;  %460 = vmatpush3.bf16.msra.mxu0 %v459_v39 }
  0x3c   :  { %461 = vmatprep.subr.bf16.mxu0 %v534_v1 }
  0x3e   :  { %442 = vmatpush3.bf16.msra.mxu1 %v441_v21 }
  0x3f   :  { %443 = vmatprep.subr.bf16.mxu1 %v534_v1  ;;  %463 = vmatpush3.bf16.msra.mxu0 %v462_v42 }
  0x40   :  { %464 = vmatprep.subr.bf16.mxu0 %v534_v1 }
  0x42   :  { %445 = vmatpush3.bf16.msra.mxu1 %v444_v24 }
  0x43   :  { %446 = vmatprep.subr.bf16.mxu1 %v534_v1  ;;  %466 = vmatpush3.bf16.msra.mxu0 %v465_v45 }
  0x44   :  { %467 = vmatprep.subr.bf16.mxu0 %v534_v1 }
  0x46   :  { %448 = vmatpush3.bf16.msra.mxu1 %v447_v27 }
  0x47   :  { %469 = vmatpush3.bf16.msra.mxu0 %v468_v48 }
  0x48   :  { %470 = vmatprep.subr.bf16.mxu0 %v534_v1 }
  0x4b   :  { %472 = vmatpush3.bf16.msra.mxu0 %v471_v56 }
  0xfc   :  { %v148_v50 = vpop.f32.mrb[0].mxu0 }
  0xfd   :  { %v149_v51 = vadd.f32 %v310_v49, %v148_v50  ;;  %v354_v52 = vpop.f32.mrb[1].mxu0 }
  0xff   :  { %v152_v53 = vmax.f32 %v149_v51, 0.0 }
 0x101   :  { %388 = vmatmul.mubr.f32.vlgmr.msra.gmra.mrb[0].mxu1 %v152_v53 }
 0x1d4   :  { %v223_v58 = vpop.f32.mrb[0].mxu1 }
 0x1d5   :  { %v224_v59 = vadd.f32 %v312_v57, %v223_v58  ;;  %v389_v60 = vpop.f32.mrb[1].mxu1 }
 0x1d7   :  { %v227_v61 = vmax.f32 %v224_v59, 0.0 }
 0x1d9   :  { %423 = vmatmul.mubr.f32.vlgmr.msra.gmra.mrb[2].mxu0 %v227_v61 }
 0x2ac   :  { %v298_v63 = vpop.f32.mrb[2].mxu0 }
 0x2ad   :  { %v299_v0 = vadd.f32 %v313_v62, %v298_v63  ;;  %v424_v1 = vpop.f32.mrb[3].mxu0 }
 0x2af   :  { %303 = vst.msk [vmem:[%s605_s2] sm:$0xff] %vm302_vm2, %v299_v0 }
 0x2b0   :  { %308 = vsyncpa [#allocation3], 1 }
 0x2b1   :  { %309 = vsyncpa [#allocation5], 1 }

</bundles_post_ra>
